<compile_context>
chip_gen: v7x
topology: tpu7x:2x2x1
jax: 0.10.0
libtpu: 0.0.40
codegen_flags: <defaults>
</compile_context>

<pallas_src>
import numpy as np
import jax
import jax.numpy as jnp
from jax import lax
from jax.experimental import pallas as pl
from jax.experimental.pallas import tpu as pltpu


def _cdiv(a: int, b: int) -> int:
    return (a + b - 1) // b


def _round_up(x: int, m: int) -> int:
    return _cdiv(x, m) * m


_MAX_TC = 2048                  # class-tile cap (multiple of 128)
_TARGET_BLOCK_BYTES = 2 << 20   # ~2 MiB logits block (f32 budget)
_MAX_TB = 2048                  # row cap (keeps the (TB, 2) side block small)


def _make_cb_focal_kernel(gamma: float, batch: int, num_classes: int,
                          tb: int, tc: int):
    gamma = float(gamma)
    gamma_int = int(gamma) if (gamma > 0.0 and gamma.is_integer()
                               and gamma <= 8.0) else None

    def kernel(side_ref, logits_ref, out_ref):
        bi = pl.program_id(0)
        cj = pl.program_id(1)

        side = side_ref[...]                                # (TB, 2)
        alpha = side[:, 0:1]                                # per-sample CB weight (f32)
        lab = side[:, 1:2].astype(jnp.int32)                # label (exact for C < 2^24)

        row = lax.broadcasted_iota(jnp.int32, (tb, tc), 0) + bi * tb
        cls = lax.broadcasted_iota(jnp.int32, (tb, tc), 1) + cj * tc
        valid = (row < batch) & (cls < num_classes)         # masks ragged edge tiles

        # Zero OOB lanes/rows before any transcendental (keeps everything finite).
        x = jnp.where(valid, logits_ref[...].astype(jnp.float32), 0.0)
        y_pos = cls == lab                                  # one-hot mask, rebuilt in-register
        y = y_pos.astype(jnp.float32)

        e = jnp.exp(-jnp.abs(x))                            # exp(-|x|)
        lg = jnp.log1p(e)                                   # log(1 + exp(-|x|))
        bce = jnp.maximum(x, 0.0) - x * y + lg              # stable BCE-with-logits

        if gamma == 0.0:
            loss = bce
        elif gamma_int is not None:
            # modulator = (1 - p_t)^gamma = sigmoid(x*(1-2y))^gamma, reusing e.
            # TODO(synk): pl.reciprocal(1 + e, approx=True) is a cheaper EUP op
            # but costs ~1e-4 relative accuracy; keep exact for parity with ref.
            inv = 1.0 / (1.0 + e)
            base = jnp.where(y_pos == (x > 0.0), e, 1.0) * inv
            mod = base
            for _ in range(gamma_int - 1):
                mod = mod * base
            loss = mod * bce
        else:
            softplus_neg_x = jnp.maximum(-x, 0.0) + lg
            loss = jnp.exp(-gamma * (y * x + softplus_neg_x)) * bce

        # Apply alpha after the class reduction (saves a (TB, TC) multiply).
        row_sum = jnp.sum(jnp.where(valid, loss, 0.0), axis=1, keepdims=True)
        partial = jnp.sum(alpha * row_sum)
        # Lane-dense (1, 8, 128) output block; wrapper reads [:, 0, 0].
        out_ref[...] = jnp.broadcast_to(partial, out_ref.shape)

    return kernel


class CBLossPallas:
    """Class-Balanced focal loss; forward pass as a Pallas TPU kernel."""

    def __init__(self, samples_per_cls, no_of_classes, beta=0.9999, gamma=2.0,
                 loss_type="focal"):
        assert loss_type in ("focal", "sigmoid", "softmax")
        # TODO(synk): only the 'focal' branch (the module default) is implemented.
        assert loss_type == "focal"
        self.no_of_classes = int(no_of_classes)
        self.gamma = float(gamma)

        effective_num = 1.0 - np.power(beta, samples_per_cls)
        weights = (1.0 - beta) / np.array(effective_num)
        weights = weights / np.sum(weights) * no_of_classes
        self.weights = jnp.asarray(weights, dtype=jnp.float32)[None, :]   # [1, C]
        self._weights_flat = jnp.asarray(weights, dtype=jnp.float32)      # [C]

    def _tiling(self, B, C, itemsize):
        # Class tiles: a full-C last block dim is always legal (even if
        # C % 128 != 0); otherwise lane-dense multiples of 128.
        if C <= _MAX_TC:
            tc, n_ct = C, 1
        else:
            tc = _MAX_TC
            n_ct = _cdiv(C, tc)
        tc_pad = _round_up(tc, 128)

        # Batch tiles: ~_TARGET_BLOCK_BYTES per logits block (budgeted in f32 so
        # the double-buffered pipeline + f32 intermediates stay well inside VMEM
        # on v5e/v6e/v7x), padding waste <= 7 rows, and >=2 grid steps whenever
        # B > 8 so both v7x TensorCores get work.
        budget_itemsize = max(int(itemsize), 4)
        tb_cap = _TARGET_BLOCK_BYTES // (tc_pad * budget_itemsize)
        tb_cap = max(8, min(_MAX_TB, (tb_cap // 8) * 8))
        if B <= 8:
            tb, n_bt = B, 1
        else:
            n_bt = max(_cdiv(B, tb_cap), 2 if n_ct == 1 else 1)
            tb = _round_up(_cdiv(B, n_bt), 8)
            n_bt = _cdiv(B, tb)
        return tb, n_bt, tc, n_ct

    def __call__(self, logits, labels):
        B, C = logits.shape
        assert C == self.no_of_classes
        labels = labels.astype(jnp.int32)
        itemsize = jnp.dtype(logits.dtype).itemsize

        tb, n_bt, tc, n_ct = self._tiling(B, C, itemsize)
        n_tiles = n_bt * n_ct

        # Tiny O(B)/O(C) glue: per-sample CB weight gather + label packed into a
        # single (B_pad, 2) f32 side array (one small DMA per grid step).
        in_range = (labels >= 0) & (labels < C)
        alpha = jnp.where(in_range,
                          self._weights_flat[jnp.clip(labels, 0, C - 1)],
                          0.0).astype(jnp.float32)
        side = jnp.stack([alpha, labels.astype(jnp.float32)], axis=1)
        b_pad = n_bt * tb
        if b_pad > B:
            side = jnp.pad(side, ((0, b_pad - B), (0, 0)))
        denom = jnp.sum(in_range.astype(jnp.float32))       # == sum(labels_one_hot)

        kernel = _make_cb_focal_kernel(self.gamma, B, C, tb, tc)
        partials = pl.pallas_call(
            kernel,
            out_shape=jax.ShapeDtypeStruct((n_tiles, 8, 128), jnp.float32),
            grid=(n_bt, n_ct),
            in_specs=[
                pl.BlockSpec((tb, 2), lambda i, j: (i, 0)),      # side (alpha, label)
                pl.BlockSpec((tb, tc), lambda i, j: (i, j)),     # logits (unpadded)
            ],
            out_specs=pl.BlockSpec((1, 8, 128),
                                   lambda i, j: (i * n_ct + j, 0, 0)),
            compiler_params=pltpu.CompilerParams(
                dimension_semantics=("parallel", "parallel"),
                vmem_limit_bytes=48 * 1024 * 1024),
            cost_estimate=pl.CostEstimate(
                flops=14 * B * C,
                transcendentals=3 * B * C,
                bytes_accessed=int(logits.size) * int(itemsize)
                               + int(side.size) * 4 + n_tiles * 8 * 128 * 4),
        )(side, logits)

        numerator = jnp.sum(partials[:, 0, 0])
        return numerator / denom


def _reference(logits, labels, weights_row, gamma):
    """Pure-JAX reference mirroring the PyTorch module (stable softplus form)."""
    C = logits.shape[1]
    y = jax.nn.one_hot(labels, C, dtype=jnp.float32)
    alpha = jnp.sum(weights_row * y, axis=1, keepdims=True)
    x = logits.astype(jnp.float32)
    sp = jnp.log1p(jnp.exp(-jnp.abs(x)))
    bce = jnp.maximum(x, 0.0) - x * y + sp
    softplus_neg_x = jnp.maximum(-x, 0.0) + sp
    modulator = jnp.exp(-gamma * y * x - gamma * softplus_neg_x)
    loss = modulator * bce
    return jnp.sum(alpha * loss) / jnp.sum(y)


if __name__ == "__main__":
    B, C = 8, 16  # small shapes: batch=8, no_of_classes=16
    key = jax.random.PRNGKey(0)
    k1, k2 = jax.random.split(key)
    logits = jax.random.normal(k1, (B, C), dtype=jnp.float32)
    labels = jax.random.randint(k2, (B,), 0, C, dtype=jnp.int32)

    samples_per_cls = [10 * (c + 1) for c in range(C)]  # deterministic counts
    cb = CBLossPallas(samples_per_cls, C, beta=0.9999, gamma=2.0, loss_type="focal")

    loss = cb(logits, labels)
    jax.block_until_ready(loss)

    ref = _reference(logits, labels, cb.weights, cb.gamma)
    assert jnp.allclose(loss, ref, rtol=1e-5, atol=1e-5), (loss, ref)

    print("KERNEL_OK")
</pallas_src>

<mosaic_0001>
module attributes {stable_mosaic.version = 11 : i64} {
  func.func @kernel(%arg0: i32, %arg1: i32, %arg2: memref<8x2xf32, #tpu.memory_space<vmem>>, %arg3: memref<8x16xf32, #tpu.memory_space<vmem>>, %arg4: memref<1x8x128xf32, #tpu.memory_space<vmem>>) attributes {dimension_semantics = [#tpu.dimension_semantics<parallel>, #tpu.dimension_semantics<parallel>], iteration_bounds = array<i64: 1, 1>, scalar_prefetch = 0 : i64, scratch_operands = 0 : i64, tpu.core_type = #tpu.core_type<tc>, window_params = [{transform_indices = @transform_0, window_bounds = array<i64: 8, 2>}, {transform_indices = @transform_1, window_bounds = array<i64: 8, 16>}, {transform_indices = @transform_2, window_bounds = array<i64: 1, 8, 128>}]} {
    %c0 = arith.constant 0 : index
    %c0_0 = arith.constant 0 : index
    %0 = vector.load %arg2[%c0, %c0_0] : memref<8x2xf32, #tpu.memory_space<vmem>>, vector<8x2xf32>
    %1 = vector.extract_strided_slice %0 {offsets = [0, 0], sizes = [8, 1], strides = [1, 1]} : vector<8x2xf32> to vector<8x1xf32>
    %2 = vector.extract_strided_slice %0 {offsets = [0, 1], sizes = [8, 1], strides = [1, 1]} : vector<8x2xf32> to vector<8x1xf32>
    %3 = arith.fptosi %2 : vector<8x1xf32> to vector<8x1xi32>
    %4 = tpu.iota {dimensions = array<i32: 0>} : vector<8x16xi32>
    %c8_i32 = arith.constant 8 : i32
    %5 = arith.muli %arg0, %c8_i32 : i32
    %6 = vector.broadcast %5 : i32 to vector<8x16xi32>
    %7 = arith.addi %4, %6 : vector<8x16xi32>
    %8 = tpu.iota {dimensions = array<i32: 1>} : vector<8x16xi32>
    %c16_i32 = arith.constant 16 : i32
    %9 = arith.muli %arg1, %c16_i32 : i32
    %10 = vector.broadcast %9 : i32 to vector<8x16xi32>
    %11 = arith.addi %8, %10 : vector<8x16xi32>
    %c8_i32_1 = arith.constant 8 : i32
    %12 = vector.broadcast %c8_i32_1 : i32 to vector<8x16xi32>
    %13 = arith.cmpi slt, %7, %12 : vector<8x16xi32>
    %c16_i32_2 = arith.constant 16 : i32
    %14 = vector.broadcast %c16_i32_2 : i32 to vector<8x16xi32>
    %15 = arith.cmpi slt, %11, %14 : vector<8x16xi32>
    %16 = arith.andi %13, %15 : vector<8x16xi1>
    %c0_3 = arith.constant 0 : index
    %c0_4 = arith.constant 0 : index
    %17 = vector.load %arg3[%c0_3, %c0_4] : memref<8x16xf32, #tpu.memory_space<vmem>>, vector<8x16xf32>
    %cst = arith.constant 0.000000e+00 : f32
    %18 = vector.broadcast %cst : f32 to vector<8x16xf32>
    %19 = arith.select %16, %17, %18 : vector<8x16xi1>, vector<8x16xf32>
    %20 = vector.broadcast %3 : vector<8x1xi32> to vector<8x16xi32>
    %21 = arith.cmpi eq, %11, %20 : vector<8x16xi32>
    %22 = arith.extui %21 : vector<8x16xi1> to vector<8x16xi32>
    %23 = arith.sitofp %22 : vector<8x16xi32> to vector<8x16xf32>
    %24 = math.absf %19 : vector<8x16xf32>
    %cst_5 = arith.constant 0.000000e+00 : f32
    %25 = vector.broadcast %cst_5 : f32 to vector<8x16xf32>
    %26 = arith.subf %25, %24 : vector<8x16xf32>
    %27 = math.exp %26 : vector<8x16xf32>
    %28 = math.log1p %27 : vector<8x16xf32>
    %cst_6 = arith.constant 0.000000e+00 : f32
    %29 = vector.broadcast %cst_6 : f32 to vector<8x16xf32>
    %30 = arith.maximumf %19, %29 : vector<8x16xf32>
    %31 = arith.mulf %19, %23 : vector<8x16xf32>
    %32 = arith.subf %30, %31 : vector<8x16xf32>
    %33 = arith.addf %32, %28 : vector<8x16xf32>
    %cst_7 = arith.constant 1.000000e+00 : f32
    %34 = vector.broadcast %cst_7 : f32 to vector<8x16xf32>
    %35 = arith.addf %34, %27 : vector<8x16xf32>
    %cst_8 = arith.constant 1.000000e+00 : f32
    %36 = vector.broadcast %cst_8 : f32 to vector<8x16xf32>
    %37 = arith.divf %36, %35 : vector<8x16xf32>
    %cst_9 = arith.constant 0.000000e+00 : f32
    %38 = vector.broadcast %cst_9 : f32 to vector<8x16xf32>
    %39 = arith.cmpf ogt, %19, %38 : vector<8x16xf32>
    %40 = arith.xori %21, %39 : vector<8x16xi1>
    %cst_10 = arith.constant dense<true> : vector<8x16xi1>
    %41 = arith.xori %40, %cst_10 : vector<8x16xi1>
    %cst_11 = arith.constant 1.000000e+00 : f32
    %42 = vector.broadcast %cst_11 : f32 to vector<8x16xf32>
    %43 = arith.select %41, %27, %42 : vector<8x16xi1>, vector<8x16xf32>
    %44 = arith.mulf %43, %37 : vector<8x16xf32>
    %45 = arith.mulf %44, %44 : vector<8x16xf32>
    %46 = arith.mulf %45, %33 : vector<8x16xf32>
    %cst_12 = arith.constant 0.000000e+00 : f32
    %47 = vector.broadcast %cst_12 : f32 to vector<8x16xf32>
    %48 = arith.select %16, %46, %47 : vector<8x16xi1>, vector<8x16xf32>
    %cst_13 = arith.constant dense<0.000000e+00> : vector<8xf32>
    %49 = vector.multi_reduction <add>, %48, %cst_13 [1] : vector<8x16xf32> to vector<8xf32>
    %50 = vector.shape_cast %49 : vector<8xf32> to vector<8x1xf32>
    %51 = arith.mulf %1, %50 : vector<8x1xf32>
    %52 = vector.shape_cast %51 : vector<8x1xf32> to vector<1x8x1xf32>
    %cst_14 = arith.constant dense<0.000000e+00> : vector<1xf32>
    %53 = vector.multi_reduction <add>, %52, %cst_14 [1, 2] : vector<1x8x1xf32> to vector<1xf32>
    %54 = vector.shape_cast %53 : vector<1xf32> to vector<1x1x1xf32>
    %55 = vector.extract %54[0, 0, 0] : f32 from vector<1x1x1xf32>
    %56 = vector.broadcast %55 : f32 to vector<1x8x128xf32>
    %c0_15 = arith.constant 0 : index
    %c0_16 = arith.constant 0 : index
    %c0_17 = arith.constant 0 : index
    %57 = vector.load %arg4[%c0_15, %c0_16, %c0_17] : memref<1x8x128xf32, #tpu.memory_space<vmem>>, vector<1x8x128xf32>
    tpu.vector_store %arg4[%c0_15, %c0_16, %c0_17], %56 {strides = array<i32>} : memref<1x8x128xf32, #tpu.memory_space<vmem>>, vector<1x8x128xf32>,
    return
  }
  func.func @transform_0(%arg0: i32, %arg1: i32) -> (i32, i32) {
    %c0_i32 = arith.constant 0 : i32
    %c0_i32_0 = arith.constant 0 : i32
    return %arg0, %c0_i32 : i32, i32
  }
  func.func @transform_1(%arg0: i32, %arg1: i32) -> (i32, i32) {
    %c0_i32 = arith.constant 0 : i32
    return %arg0, %arg1 : i32, i32
  }
  func.func @transform_2(%arg0: i32, %arg1: i32) -> (i32, i32, i32) {
    %c1_i32 = arith.constant 1 : i32
    %0 = arith.muli %arg0, %c1_i32 : i32
    %1 = arith.addi %0, %arg1 : i32
    %c0_i32 = arith.constant 0 : i32
    %c0_i32_0 = arith.constant 0 : i32
    %c0_i32_1 = arith.constant 0 : i32
    return %1, %c0_i32, %c0_i32_0 : i32, i32, i32
  }
}

</mosaic_0001>

<bundles_post_ra>
// kernel: tpu_custom_call.1
= control target key start
LH: loop header
LB: loop body
LE: loop exit
PB: predicated region body
PF: predicated region fallthrough
CT: control target
= control target key end

     0   :  { %v139_v1 = vmov 1   ;;  %s178_s0 = inlined_call_operand.vmem [shape: f32[8,2], index: 0, kind: input, shape index: {}]   ;;  %s179_s1 = inlined_call_operand.vmem [shape: f32[8,16], index: 1, kind: input, shape index: {}]   ;;  %s180_s2 = inlined_call_operand.hbm [shape: f32[1,8,128], index: 2, kind: output, shape index: {}]  }
   0x1   :  { %v13_v0 = vld [vmem:[%s178_s0] sm:$0xff]  ;;  %108 = vset.pattern.permute.xlu0 %v139_v1 }
   0x2   :  { %v100_v2 = vtrunc.f32 %v13_v0 }
   0x3   :  { %7 = vsyncpa [#allocation3], 0  ;;  %v20_v4 = vlaneseq  ;;  %v28_v6 = vld [vmem:[%s179_s1] sm:$0xff]  ;;  %v140_v22 = vmov 0.0   ;;  %vm141_vm5 = vmmov 1   ;;  %vm64_vm7 = vcmask 130048  }
   0x4   :  { %v101_v3 = vcvt.f32.s32 %v100_v2  ;;  %vm69_vm8 = vcmask 7168   ;;  %s142_s0 = smov [#allocation2]  }
   0x5   :  { %v21_v5 = vand.u32 127, %v20_v4  ;;  %s91_s1 = sshll.u32 %s142_s0, 4  ;;  %s92_s1 = int_to_ptr.vmem [resolvable:$true] %s91_s1 }
   0x6   :  { %31 = vperm.xlu0 %108, %v101_v3   ;;  %s115_s14 = scalar_lea.vmem %s92_s1, 128  ;;  %p120_p1 = scmp.lt.s32.totalorder %s92_s1, %s92_s1 }
   0x7   :  { %vm26_vm0 = vcmp.lt.s32.totalorder %v21_v5, 16  ;;  %p116_p0 = scmp.ne.s32.totalorder %s92_s1, %s115_s14  ;;  %p121_p2 = scmp.lt.s32.totalorder %s115_s14, %s115_s14 }
   0x8   :  { %v29_v7 = vsel %vm26_vm0, %v28_v6, 0.0 }
   0x9   :  { %v36_v8 = vand.u32 2147483647, %v29_v7  ;;  %vm56_vm1 = vcmp.gt.f32.partialorder %v29_v7, 0.0  ;;  %v49_v20 = vmax.f32 %v29_v7, 0.0  ;;  %p122_p3 = por %p121_p2, %p120_p1 }
   0xb   :  { %v37_v9 = vsub.f32 0.0, %v36_v8  ;;  %p123_p4 = pnand %p122_p3, %p116_p0 }
   0xd   :  { %v38_v10 = vmul.f32 1.442695, %v37_v9 }
   0xf   :  { %109 = vpow2.f32 %v38_v10 }
  0x19   :  { %v110_v11 = vpop.eup %109 }
  0x1a   :  { %v40_v12 = vadd.f32 1.0, %v110_v11  ;;  %v43_v13 = vmul.f32 -0.5, %v110_v11  ;;  %v46_v16 = vand.u32 2147483647, %v110_v11 }
  0x1c   :  { %111 = vlog2.f32 %v40_v12  ;;  %v44_v14 = vadd.f32 1.0, %v43_v13  ;;  %vm47_vm3 = vcmp.lt.f32.partialorder %v46_v16, 0.0004427343 }
  0x1d   :  { %113 = vrcp.f32 %v40_v12 }
  0x1e   :  { %v45_v19 = vmul.f32 %v110_v11, %v44_v14 }
  0x26   :  { %v112_v15 = vpop.eup %111 }
  0x27   :  { %v42_v18 = vmul.f32 0.6931472, %v112_v15  ;;  %v114_v21 = vpop.eup %113 }
  0x29   :  { %v48_v26 = vsel %vm47_vm3, %v45_v19, %v42_v18 }
  0x85   :  { %v32_v17 = vpop.permute.xlu0 %31 }
  0x86   :  { %vm33_vm2 = vcmp.eq.s32.totalorder %v21_v5, %v32_v17 }
  0x87   :  { %v99_v23 = vsel %vm33_vm2, 1.0, %v140_v22  ;;  %vm57_vm4 = vmxor %vm33_vm2, %vm56_vm1 }
  0x88   :  { %v50_v24 = vmul.f32 %v99_v23, %v29_v7  ;;  %vm58_vm6 = vmxor %vm57_vm4, %vm141_vm5 }
  0x89   :  { %v59_v25 = vsel %vm58_vm6, %v110_v11, 1.0 }
  0x8a   :  { %v51_v27 = vsub.f32 %v49_v20, %v50_v24  ;;  %v60_v28 = vmul.f32 %v114_v21, %v59_v25 }
  0x8c   :  { %v61_v29 = vmul.f32 %v60_v28, %v60_v28  ;;  %v52_v30 = vadd.f32 %v51_v27, %v48_v26 }
  0x8e   :  { %v62_v31 = vmul.f32 %v61_v29, %v52_v30 }
  0x90   :  { %v63_v32 = vsel %vm26_vm0, %v62_v31, 0.0 }
  0x91   :  { %v65_v33 = vsel %vm64_vm7, %v63_v32, 0.0 }
  0x92   :  { %66 = vadd.xlane.f32.xlu0 %v65_v33 }
 0x11f   :  { %v67_v34 = vpop.xlane.xlu0 %66 }
 0x120   :  { %v68_v35 = vmul.f32 %v67_v34, %v13_v0 }
 0x122   :  { %v70_v36 = vsel %vm69_vm8, %v68_v35, 0.0 }
 0x123   :  { %71 = vadd.xlane.f32.xlu1 %v70_v36 }
 0x1b0   :  { %v72_v37 = vpop.xlane.xlu1 %71 }
 0x1b1   :  { %v73_v38 = vrot.slane %v72_v37, 4 }
 0x1b3   :  { %v74_v39 = vadd.f32 %v73_v38, %v72_v37 }
 0x1b5   :  { %v75_v40 = vrot.slane %v74_v39, 2 }
 0x1b7   :  { %v76_v41 = vadd.f32 %v75_v40, %v74_v39 }
 0x1b9   :  { %v77_v42 = vrot.slane %v76_v41, 1 }
 0x1bb   :  { %v78_v43 = vadd.f32 %v77_v42, %v76_v41 }
 0x1bd   :  { %102 = vpush %v78_v43 }
 0x1ee   :  { %s103_s13 = spop %102 }
 0x1ef   :  { %v80_v44 = vstv %s103_s13 }
 0x1f0   :  { %81 = vst [vmem:[#allocation2] sm:$0xff] %v80_v44 }
 0x1f1   :  { %126 = shalt.err (!%p123_p4)
}
 0x1f2   :  { %s127_s17 = scalar_lea.hbm %s180_s2, 128 }
 0x1f3   :  { %p128_p5 = scmp.ne.s32.totalorder %s180_s2, %s127_s17  ;;  %p131_p6 = scmp.lt.u32.totalorder %s127_s17, %s180_s2 }
 0x1f5   :  { %p133_p7 = pnand %p131_p6, %p128_p5 }
 0x1f7   :  { %136 = shalt.err (!%p133_p7)
}
 0x1f8   :  { %94 = dma.vmem_to_hbm [thread:$0]  %s92_s1, 128, %s180_s2, [#allocation3]  }
 0x1f9   :  { %137 = dma.done.wait [#allocation3], 128  }
 0x1fa   :  { %138 = vsyncadd [#allocation3], 4294967168 }
 0x1fb   :  { %98 = vsyncpa [#allocation3], 1 }

</bundles_post_ra>
